<compile_context>
chip_gen: v7x
topology: tpu7x:2x2x1
jax: 0.10.0
libtpu: 0.0.40
codegen_flags: <defaults>
</compile_context>

<pallas_src>
import jax
import jax.numpy as jnp
from jax.experimental import pallas as pl
from jax.experimental.pallas import tpu as pltpu


def _round_up(x, m):
    return (x + m - 1) // m * m


def _degree_gcn_node_apply_kernel(h_ref, deg_ref, w_ref, b_ref, out_ref):
    # h_ref:   (TILE_N, F_in)     float32
    # deg_ref: (TILE_N, 1)        float32
    # w_ref:   (F_in, F_out_pad)  float32  (pre-transposed, zero-padded Linear weight)
    # b_ref:   (1, F_out_pad)     float32
    # out_ref: (TILE_N, F_out_pad) float32
    inv_deg = pl.reciprocal(deg_ref[...], approx=False)   # EUP; exact 1/x
    h_scaled = h_ref[...] * inv_deg                        # broadcast over lanes
    acc = jnp.dot(h_scaled, w_ref[...], preferred_element_type=jnp.float32)
    out_ref[...] = acc + b_ref[...]


def prepare_linear_params(weight, bias):
    """One-time parameter prep (hoisted out of the per-call path).

    weight: (out_feats, in_feats)  PyTorch nn.Linear layout
    bias:   (out_feats,)
    returns (w_t_pad (in_feats, out_pad), b_pad (1, out_pad), out_feats)
    where out_pad = round_up(out_feats, 128) for lane-dense output stores.
    """
    out_feats, in_feats = weight.shape
    out_pad = _round_up(out_feats, 128)
    w_t = jnp.zeros((in_feats, out_pad), jnp.float32)
    w_t = w_t.at[:, :out_feats].set(jnp.transpose(weight).astype(jnp.float32))
    b = jnp.zeros((1, out_pad), jnp.float32)
    b = b.at[:, :out_feats].set(bias.astype(jnp.float32).reshape(1, out_feats))
    return w_t, b, out_feats


def degree_gcn_node_apply(h, degree, w_t_pad, b_pad, out_feats, *, tile_n=512):
    """Pallas implementation of DegreeGCNPlusNodeApplyModule.forward.

    h:        (N, in_feats) float32
    degree:   (N,)          float32 (positive)
    w_t_pad:  (in_feats, out_pad) float32 from prepare_linear_params
    b_pad:    (1, out_pad)  float32 from prepare_linear_params
    returns   (N, out_feats) float32
    """
    N, in_feats = h.shape
    out_pad = w_t_pad.shape[1]

    # Tile the node axis; tile must be a multiple of 8 (sublane) and N is padded
    # up to a whole number of tiles.  tile_n=512 keeps well under VMEM even on
    # v7x (64 MiB) while amortizing per-step overhead on v5e/v6e.
    tile_n = min(tile_n, _round_up(N, 8))
    n_pad = _round_up(N, tile_n)

    h_p = h.astype(jnp.float32)
    deg_p = degree.astype(jnp.float32).reshape(N, 1)
    if n_pad != N:
        h_p = jnp.pad(h_p, ((0, n_pad - N), (0, 0)))
        # pad degrees with 1.0 so the padded rows never divide by zero
        deg_p = jnp.pad(deg_p, ((0, n_pad - N), (0, 0)), constant_values=1.0)

    grid = (n_pad // tile_n,)

    cost = pl.CostEstimate(
        flops=2 * n_pad * in_feats * out_pad,
        transcendentals=0,
        bytes_accessed=4 * (n_pad * in_feats + n_pad * out_pad
                            + in_feats * out_pad + n_pad + out_pad),
    )

    out = pl.pallas_call(
        _degree_gcn_node_apply_kernel,
        out_shape=jax.ShapeDtypeStruct((n_pad, out_pad), jnp.float32),
        grid=grid,
        in_specs=[
            pl.BlockSpec((tile_n, in_feats), lambda i: (i, 0)),   # h tile
            pl.BlockSpec((tile_n, 1), lambda i: (i, 0)),          # degree tile
            pl.BlockSpec((in_feats, out_pad), lambda i: (0, 0)),  # W resident
            pl.BlockSpec((1, out_pad), lambda i: (0, 0)),         # b resident
        ],
        out_specs=pl.BlockSpec((tile_n, out_pad), lambda i: (i, 0)),
        compiler_params=pltpu.CompilerParams(
            dimension_semantics=("parallel",),
        ),
        cost_estimate=cost,
    )(h_p, deg_p, w_t_pad, b_pad)

    return out[:N, :out_feats]


if __name__ == "__main__":
    key = jax.random.PRNGKey(0)
    k_h, k_deg, k_w, k_b = jax.random.split(key, 4)

    N = 16          # number of nodes
    in_feats = 32
    out_feats = 64

    h = jax.random.normal(k_h, (N, in_feats), dtype=jnp.float32)
    # degrees are positive integers >= 1 (as in a real graph)
    degree = jax.random.randint(k_deg, (N,), 1, 6).astype(jnp.float32)

    # Deterministic Linear parameters (synthetic, not a checkpoint load).
    bound = 1.0 / (in_feats ** 0.5)
    weight = jax.random.uniform(
        k_w, (out_feats, in_feats), minval=-bound, maxval=bound, dtype=jnp.float32
    )
    bias = jax.random.uniform(
        k_b, (out_feats,), minval=-bound, maxval=bound, dtype=jnp.float32
    )

    # One-time parameter prep (transpose + lane padding) hoisted out of the call.
    w_t_pad, b_pad, out_f = prepare_linear_params(weight, bias)

    out = degree_gcn_node_apply(h, degree, w_t_pad, b_pad, out_f)
    jax.block_until_ready(out)

    # Reference check in plain JAX (same math as the PyTorch module).
    ref = (h / degree[:, None]) @ weight.T + bias
    assert out.shape == (N, out_feats)
    assert jnp.allclose(out, ref, atol=1e-5, rtol=1e-5)

    print("KERNEL_OK")
</pallas_src>

<mosaic_0001>
module attributes {stable_mosaic.version = 11 : i64} {
  func.func @_degree_gcn_node_apply_kernel(%arg0: i32, %arg1: memref<16x32xf32, #tpu.memory_space<vmem>>, %arg2: memref<16x1xf32, #tpu.memory_space<vmem>>, %arg3: memref<32x128xf32, #tpu.memory_space<vmem>>, %arg4: memref<1x128xf32, #tpu.memory_space<vmem>>, %arg5: memref<16x128xf32, #tpu.memory_space<vmem>>) attributes {dimension_semantics = [#tpu.dimension_semantics<parallel>], iteration_bounds = array<i64: 1>, scalar_prefetch = 0 : i64, scratch_operands = 0 : i64, tpu.core_type = #tpu.core_type<tc>, window_params = [{transform_indices = @transform_0, window_bounds = array<i64: 16, 32>}, {transform_indices = @transform_1, window_bounds = array<i64: 16, 1>}, {pipeline_mode = #tpu.pipeline_mode<synchronous>, transform_indices = @transform_2, window_bounds = array<i64: 32, 128>}, {pipeline_mode = #tpu.pipeline_mode<synchronous>, transform_indices = @transform_3, window_bounds = array<i64: 1, 128>}, {transform_indices = @transform_4, window_bounds = array<i64: 16, 128>}]} {
    %c0 = arith.constant 0 : index
    %c0_0 = arith.constant 0 : index
    %0 = vector.load %arg2[%c0, %c0_0] : memref<16x1xf32, #tpu.memory_space<vmem>>, vector<16x1xf32>
    %1 = tpu.reciprocal %0 : vector<16x1xf32> -> vector<16x1xf32>
    %c0_1 = arith.constant 0 : index
    %c0_2 = arith.constant 0 : index
    %2 = vector.load %arg1[%c0_1, %c0_2] : memref<16x32xf32, #tpu.memory_space<vmem>>, vector<16x32xf32>
    %3 = vector.broadcast %1 : vector<16x1xf32> to vector<16x32xf32>
    %4 = arith.mulf %2, %3 : vector<16x32xf32>
    %c0_3 = arith.constant 0 : index
    %c0_4 = arith.constant 0 : index
    %5 = vector.load %arg3[%c0_3, %c0_4] : memref<32x128xf32, #tpu.memory_space<vmem>>, vector<32x128xf32>
    %cst = arith.constant dense<0.000000e+00> : vector<16x128xf32>
    %6 = tpu.matmul %4, %5, %cst {dimension_numbers = #tpu.dot_dimension_numbers<[1], [0], [0], [1], [0, 0, 1, 1], [], []>} : vector<16x32xf32>, vector<32x128xf32>, vector<16x128xf32> -> vector<16x128xf32>
    %c0_5 = arith.constant 0 : index
    %c0_6 = arith.constant 0 : index
    %7 = vector.load %arg4[%c0_5, %c0_6] : memref<1x128xf32, #tpu.memory_space<vmem>>, vector<1x128xf32>
    %8 = vector.broadcast %7 : vector<1x128xf32> to vector<16x128xf32>
    %9 = arith.addf %6, %8 : vector<16x128xf32>
    %c0_7 = arith.constant 0 : index
    %c0_8 = arith.constant 0 : index
    %10 = vector.load %arg5[%c0_7, %c0_8] : memref<16x128xf32, #tpu.memory_space<vmem>>, vector<16x128xf32>
    tpu.vector_store %arg5[%c0_7, %c0_8], %9 {strides = array<i32>} : memref<16x128xf32, #tpu.memory_space<vmem>>, vector<16x128xf32>,
    return
  }
  func.func @transform_0(%arg0: i32) -> (i32, i32) {
    %c0_i32 = arith.constant 0 : i32
    %c0_i32_0 = arith.constant 0 : i32
    return %arg0, %c0_i32 : i32, i32
  }
  func.func @transform_1(%arg0: i32) -> (i32, i32) {
    %c0_i32 = arith.constant 0 : i32
    %c0_i32_0 = arith.constant 0 : i32
    return %arg0, %c0_i32 : i32, i32
  }
  func.func @transform_2(%arg0: i32) -> (i32, i32) {
    %c0_i32 = arith.constant 0 : i32
    %c0_i32_0 = arith.constant 0 : i32
    %c0_i32_1 = arith.constant 0 : i32
    return %c0_i32, %c0_i32_0 : i32, i32
  }
  func.func @transform_3(%arg0: i32) -> (i32, i32) {
    %c0_i32 = arith.constant 0 : i32
    %c0_i32_0 = arith.constant 0 : i32
    %c0_i32_1 = arith.constant 0 : i32
    return %c0_i32, %c0_i32_0 : i32, i32
  }
  func.func @transform_4(%arg0: i32) -> (i32, i32) {
    %c0_i32 = arith.constant 0 : i32
    %c0_i32_0 = arith.constant 0 : i32
    return %arg0, %c0_i32 : i32, i32
  }
}

</mosaic_0001>

<bundles_post_ra>
// kernel: tpu_custom_call.1
= control target key start
LH: loop header
LB: loop body
LE: loop exit
PB: predicated region body
PF: predicated region fallthrough
CT: control target
= control target key end

     0   :  { %9 = vsyncpa [#allocation3], 0  ;;  %s323_s0 = inlined_call_operand.vmem [shape: f32[16,32], index: 0, kind: input, shape index: {}]   ;;  %s324_s1 = inlined_call_operand.vmem [shape: f32[16,1], index: 1, kind: input, shape index: {}]   ;;  %s325_s2 = inlined_call_operand.hbm [shape: f32[32,128], index: 2, kind: input, shape index: {}]   ;;  %s326_s3 = inlined_call_operand.vmem [shape: f32[1,128], index: 3, kind: input, shape index: {}]   ;;  %s327_s4 = inlined_call_operand.hbm [shape: f32[16,128], index: 4, kind: output, shape index: {}]  }
   0x1   :  { %10 = vsyncpa [#allocation4], 0  ;;  %s248_s15 = smov [#allocation2]   ;;  %s200_s19 = scalar_lea.hbm %s325_s2, 512 }
   0x2   :  { %s20_s16 = sshll.u32 %s248_s15, 4  ;;  %p201_p0 = scmp.ne.s32.totalorder %s325_s2, %s200_s19  ;;  %s21_s16 = int_to_ptr.vmem [resolvable:$true] %s20_s16 }
   0x3   :  { %p204_p1 = scmp.lt.u32.totalorder %s200_s19, %s325_s2 }
   0x5   :  { %p206_p2 = pnand %p204_p1, %p201_p0 }
   0x7   :  { %209 = shalt.err (!%p206_p2)
}
   0x8   :  { %s210_s24 = scalar_lea.vmem %s21_s16, 512  ;;  %p215_p4 = scmp.lt.s32.totalorder %s21_s16, %s21_s16 }
   0x9   :  { %p211_p3 = scmp.ne.s32.totalorder %s21_s16, %s210_s24  ;;  %p216_p5 = scmp.lt.s32.totalorder %s210_s24, %s210_s24 }
   0xb   :  { %p217_p6 = por %p216_p5, %p215_p4 }
   0xd   :  { %p218_p7 = pnand %p217_p6, %p211_p3 }
   0xf   :  { %221 = shalt.err (!%p218_p7)
}
  0x10   :  { %s249_s25 = smov 128   ;;  %s250_s26 = smov 8  }
  0x11   :  { %26 = dma.hbm_to_vmem [thread:$0]  %s325_s2, 512, %s21_s16, [#allocation3], %s249_s25, %s249_s25, %s250_s26  }
  0x12   :  { %244 = dma.done.wait [#allocation3], 512  }
  0x13   :  { %245 = vsyncadd [#allocation3], 4294966784  ;;  %v251_v0 = vmov 0   ;;  %v32_v1 = vld [vmem:[%s324_s1] sm:$0xff]  ;;  %v33_v2 = vld [vmem:[%s324_s1 + $0x8] sm:$0xff]  ;;  %vm61_vm0 = vcmask 261120  }
  0x14   :  { %195 = vset.pattern.permute.xlu0 %v251_v0  ;;  %v50_v3 = vld [vmem:[#allocation2] sm:$0xff]  ;;  %196 = vrcp.f32 %v32_v1  ;;  %v51_v4 = vld [vmem:[#allocation2 + $0x8] sm:$0xff]  ;;  %v52_v7 = vld [vmem:[#allocation2 + $0x10] sm:$0xff]  ;;  %s252_s11 = smov [#allocation5]  }
  0x15   :  { %v182_v5 = vpack.c.bf16 %v51_v4, %v50_v3  ;;  %198 = vrcp.f32 %v33_v2  ;;  %v53_v8 = vld [vmem:[#allocation2 + $0x18] sm:$0xff]  ;;  %v36_v11 = vld [vmem:[%s323_s0] sm:$0xff]  ;;  %v37_v14 = vld [vmem:[%s323_s0 + $0x8] sm:$0xff]  ;;  %s150_s12 = sshll.u32 %s252_s11, 4  ;;  %s151_s12 = int_to_ptr.vmem [resolvable:$true] %s150_s12 }
  0x16   :  { %v186_v9 = vpack.c.bf16 %v53_v8, %v52_v7  ;;  %v162_v17 = vld [vmem:[%s326_s3] ss:$0 sm:$0xff]  ;;  %s222_s13 = scalar_lea.vmem %s151_s12, 256  ;;  %p227_p9 = scmp.lt.s32.totalorder %s151_s12, %s151_s12 }
  0x17   :  { %183 = vmatprep.subr.bf16.mxu0 %v182_v5  ;;  %p223_p8 = scmp.ne.s32.totalorder %s151_s12, %s222_s13  ;;  %p228_p10 = scmp.lt.s32.totalorder %s222_s13, %s222_s13 }
  0x18   :  { %185 = vmatpush3.bf16.msra.mxu0 %v182_v5 }
  0x19   :  { %187 = vmatprep.subr.bf16.mxu0 %v186_v9  ;;  %p229_p11 = por %p228_p10, %p227_p9 }
  0x1b   :  { %p230_p12 = pnand %p229_p11, %p223_p8 }
  0x1c   :  { %189 = vmatpush3.bf16.msra.mxu0 %v186_v9 }
  0x1e   :  { %v197_v6 = vpop.eup %196 }
  0x1f   :  { %40 = vperm.xlu0 %195, %v197_v6   ;;  %v199_v10 = vpop.eup %198 }
  0x23   :  { %45 = vperm.xlu0 %195, %v199_v10  }
  0x9e   :  { %v41_v12 = vpop.permute.xlu0 %40 }
  0x9f   :  { %v48_v13 = vmul.f32 %v41_v12, %v36_v11 }
  0xa1   :  { %179 = vmatprep.mubr.msk.f32.mxu0 %vm61_vm0, %v48_v13 }
  0xa2   :  { %v46_v15 = vpop.permute.xlu0 %45 }
  0xa3   :  { %v49_v16 = vmul.f32 %v46_v15, %v37_v14 }
  0xa5   :  { %180 = vmatmul.mubr.msk.f32.vlgmr.msra.gmra.mrb[0].mxu0 %vm61_vm0, %v49_v16 }
 0x178   :  { %v181_v18 = vpop.f32.mrb[0].mxu0 }
 0x179   :  { %v140_v19 = vadd.f32 %v181_v18, %v162_v17  ;;  %v134_v20 = vpop.f32.mrb[1].mxu0 }
 0x17a   :  { %v135_v21 = vadd.f32 %v162_v17, %v134_v20 }
 0x17b   :  { %144 = vst [vmem:[#allocation5 + $0x8] sm:$0xff] %v140_v19 }
 0x17c   :  { %143 = vst [vmem:[#allocation5] sm:$0xff] %v135_v21 }
 0x17d   :  { %233 = shalt.err (!%p230_p12)
}
 0x17e   :  { %s234_s3 = scalar_lea.hbm %s327_s4, 256 }
 0x17f   :  { %p235_p13 = scmp.ne.s32.totalorder %s327_s4, %s234_s3  ;;  %p238_p0 = scmp.lt.u32.totalorder %s234_s3, %s327_s4 }
 0x181   :  { %p240_p1 = pnand %p238_p0, %p235_p13 }
 0x183   :  { %243 = shalt.err (!%p240_p1)
}
 0x184   :  { %156 = dma.vmem_to_hbm [thread:$0]  %s151_s12, 256, %s327_s4, [#allocation4], %s249_s25, %s249_s25, %s250_s26  }
 0x185   :  { %246 = dma.done.wait [#allocation4], 256  }
 0x186   :  { %247 = vsyncadd [#allocation4], 4294967040 }
 0x187   :  { %160 = vsyncpa [#allocation3], 1 }
 0x188   :  { %161 = vsyncpa [#allocation4], 1 }

</bundles_post_ra>
